<compile_context>
chip_gen: v6e
topology: v6e:2x2x1
jax: 0.10.0
libtpu: 0.0.40
codegen_flags: <defaults>
</compile_context>

<pallas_src>
import math

import jax
import jax.numpy as jnp
from jax.experimental import pallas as pl
from jax.experimental.pallas import tpu as pltpu

# ---- static model config (small, consistent with the module) ----
B = 2            # batch
S = 8            # tokens per observation
D_OBS = 16       # per-token observation dim
H = 32           # features_dim (transformer hidden)
N_HEADS = 4
HEAD_DIM = H // N_HEADS
FF = 64          # feed-forward dim
N_ACT = 4        # gym.spaces.Discrete(4).n
N_OUT = N_ACT + 1   # fused [action logits | value]

# ---- packed parameter slab layout: one (N_ROWS, 128) f32 buffer ----
LANES = 128
R_WEMB = 0                    # (D_OBS, H)   rows  0..15
R_WQKV = R_WEMB + D_OBS       # (H, 3H)      rows 16..47   fused Wq|Wk|Wv
R_WO = R_WQKV + H             # (H, H)       rows 48..79
R_W1 = R_WO + H               # (H, FF)      rows 80..111
R_W2 = R_W1 + H               # (FF, H)      rows 112..175
R_WHEAD = R_W2 + FF           # (H, N_OUT)   rows 176..207 fused action|value
R_VEC = R_WHEAD + H           # 10 one-row vectors (biases / LN params)
(V_BEMB, V_BQKV, V_BO, V_LN1G, V_LN1B,
 V_B1, V_B2, V_LN2G, V_LN2B, V_BHEAD) = range(10)
N_ROWS = ((R_VEC + 10 + 7) // 8) * 8   # 224 rows -> 112 KiB, sublane aligned


def _layernorm(x, gamma, beta, eps=1e-5):
    mu = jnp.mean(x, axis=-1, keepdims=True)
    var = jnp.mean((x - mu) ** 2, axis=-1, keepdims=True)
    return (x - mu) * jax.lax.rsqrt(var + eps) * gamma + beta


# ----------------------------------------------------------------------------
# kernel
# ----------------------------------------------------------------------------
def policy_kernel(obs_ref, slab_ref, out_ref):
    tb, s, d_obs = obs_ref.shape
    bs = tb * s

    def vec(idx, width):                       # one-row bias / LN parameter
        r = R_VEC + idx
        return slab_ref[r:r + 1, 0:width]      # (1, width)

    # ---- token embedding: flatten leading dims, one 2-D matmul ----
    x = obs_ref[...].astype(jnp.float32).reshape(bs, d_obs)
    x = jnp.dot(x, slab_ref[R_WEMB:R_WEMB + D_OBS, 0:H],
                preferred_element_type=jnp.float32) + vec(V_BEMB, H)

    # ---- fused QKV projection: (bs, H) @ (H, 3H) ----
    qkv = jnp.dot(x, slab_ref[R_WQKV:R_WQKV + H, 0:3 * H],
                  preferred_element_type=jnp.float32) + vec(V_BQKV, 3 * H)

    # ---- multi-head self attention (post-norm encoder layer) ----
    scale = 1.0 / math.sqrt(HEAD_DIM)
    attn = jnp.zeros((bs, H), jnp.float32)
    for h in range(N_HEADS):                   # static unroll
        lo = h * HEAD_DIM
        q_h = qkv[:, lo:lo + HEAD_DIM].reshape(tb, s, HEAD_DIM)
        k_h = qkv[:, H + lo:H + lo + HEAD_DIM].reshape(tb, s, HEAD_DIM)
        v_h = qkv[:, 2 * H + lo:2 * H + lo + HEAD_DIM].reshape(tb, s, HEAD_DIM)

        sc = jnp.einsum("bqd,bkd->bqk", q_h, k_h,
                        preferred_element_type=jnp.float32) * scale
        sc = sc - jnp.max(sc, axis=-1, keepdims=True)
        p = jnp.exp(sc)                                        # unnormalized
        inv_l = pl.reciprocal(jnp.sum(p, axis=-1, keepdims=True), approx=True)
        ctx = jnp.einsum("bqk,bkd->bqd", p, v_h,
                         preferred_element_type=jnp.float32) * inv_l

        # Fold this head's slice of the output projection in here; summing the
        # per-head partial products replaces the lane-axis concatenate.
        attn = attn + jnp.dot(
            ctx.reshape(bs, HEAD_DIM),
            slab_ref[R_WO + lo:R_WO + lo + HEAD_DIM, 0:H],
            preferred_element_type=jnp.float32)
    attn = attn + vec(V_BO, H)
    x = _layernorm(x + attn, vec(V_LN1G, H), vec(V_LN1B, H))

    # ---- feed-forward (ReLU) ----
    ff = jnp.dot(x, slab_ref[R_W1:R_W1 + H, 0:FF],
                 preferred_element_type=jnp.float32) + vec(V_B1, FF)
    ff = jnp.maximum(ff, 0.0)
    ff = jnp.dot(ff, slab_ref[R_W2:R_W2 + FF, 0:H],
                 preferred_element_type=jnp.float32) + vec(V_B2, H)
    x = _layernorm(x + ff, vec(V_LN2G, H), vec(V_LN2B, H))

    # ---- mean pool over sequence -> features (tb, H) ----
    feat = jnp.mean(x.reshape(tb, s, H), axis=1)

    # ---- fused policy / value heads: (tb, H) @ (H, N_ACT+1) ----
    out_ref[...] = (jnp.dot(feat, slab_ref[R_WHEAD:R_WHEAD + H, 0:N_OUT],
                            preferred_element_type=jnp.float32)
                    + vec(V_BHEAD, N_OUT))


# ----------------------------------------------------------------------------
# wrapper
# ----------------------------------------------------------------------------
def transformer_policy_forward(obs, slab, *, batch_tile=None):
    b = obs.shape[0]
    tb = b if batch_tile is None else batch_tile
    assert b % tb == 0, "batch must be divisible by the batch tile"

    out = pl.pallas_call(
        policy_kernel,
        out_shape=jax.ShapeDtypeStruct((b, N_OUT), jnp.float32),
        grid=(pl.cdiv(b, tb),),
        in_specs=[
            pl.BlockSpec((tb, S, D_OBS), lambda i: (i, 0, 0)),
            pl.BlockSpec((N_ROWS, LANES), lambda i: (0, 0)),   # whole slab, 1 DMA
        ],
        out_specs=pl.BlockSpec((tb, N_OUT), lambda i: (i, 0)),
        compiler_params=pltpu.CompilerParams(
            dimension_semantics=("parallel",)),  # batch tiles shard across TCs (v7x)
    )(obs, slab)
    return out[:, :N_ACT], out[:, N_ACT:N_OUT]


# ----------------------------------------------------------------------------
# parameters
# ----------------------------------------------------------------------------
def init_params(key):
    """Deterministic synthetic params, torch.nn.Linear-style init, stored (in, out)."""
    keys = jax.random.split(key, 16)

    def lin(k, fan_in, fan_out):
        bound = 1.0 / math.sqrt(fan_in)
        kw, kb = jax.random.split(k)
        w = jax.random.uniform(kw, (fan_in, fan_out), jnp.float32, -bound, bound)
        b = jax.random.uniform(kb, (1, fan_out), jnp.float32, -bound, bound)
        return w, b

    w_emb, b_emb = lin(keys[0], D_OBS, H)
    wq, bq = lin(keys[1], H, H)
    wk, bk = lin(keys[2], H, H)
    wv, bv = lin(keys[3], H, H)
    wo, bo = lin(keys[4], H, H)
    ln1g = jnp.ones((1, H), jnp.float32)
    ln1b = jnp.zeros((1, H), jnp.float32)
    w1, b1 = lin(keys[5], H, FF)
    w2, b2 = lin(keys[6], FF, H)
    ln2g = jnp.ones((1, H), jnp.float32)
    ln2b = jnp.zeros((1, H), jnp.float32)
    wa, ba = lin(keys[7], H, N_ACT)      # action_net
    wvh, bvh = lin(keys[8], H, 1)        # value_net
    return (w_emb, b_emb, wq, bq, wk, bk, wv, bv, wo, bo,
            ln1g, ln1b, w1, b1, w2, b2, ln2g, ln2b,
            wa, ba, wvh, bvh)


def pack_params(params):
    """Fuse QKV / heads and pack everything into one (N_ROWS, 128) f32 slab."""
    (w_emb, b_emb, wq, bq, wk, bk, wv, bv, wo, bo,
     ln1g, ln1b, w1, b1, w2, b2, ln2g, ln2b, wa, ba, wvh, bvh) = params
    w_qkv = jnp.concatenate([wq, wk, wv], axis=1)     # (H, 3H)
    b_qkv = jnp.concatenate([bq, bk, bv], axis=1)     # (1, 3H)
    w_head = jnp.concatenate([wa, wvh], axis=1)       # (H, N_OUT)
    b_head = jnp.concatenate([ba, bvh], axis=1)       # (1, N_OUT)

    slab = jnp.zeros((N_ROWS, LANES), jnp.float32)

    def put(s, r, a):
        return s.at[r:r + a.shape[0], :a.shape[1]].set(a)

    slab = put(slab, R_WEMB, w_emb)
    slab = put(slab, R_WQKV, w_qkv)
    slab = put(slab, R_WO, wo)
    slab = put(slab, R_W1, w1)
    slab = put(slab, R_W2, w2)
    slab = put(slab, R_WHEAD, w_head)
    vecs = [b_emb, b_qkv, bo, ln1g, ln1b, b1, b2, ln2g, ln2b, b_head]
    for j, v in enumerate(vecs):
        slab = put(slab, R_VEC + j, v)
    return slab


# ----------------------------------------------------------------------------
# pure-JAX reference (for correctness)
# ----------------------------------------------------------------------------
def reference_forward(obs, params):
    (w_emb, b_emb, wq, bq, wk, bk, wv, bv, wo, bo,
     ln1g, ln1b, w1, b1, w2, b2, ln2g, ln2b, wa, ba, wvh, bvh) = params
    with jax.default_matmul_precision("highest"):
        x = jnp.einsum("bsd,dh->bsh", obs, w_emb) + b_emb
        q = jnp.einsum("bsh,hk->bsk", x, wq) + bq
        k = jnp.einsum("bsh,hk->bsk", x, wk) + bk
        v = jnp.einsum("bsh,hk->bsk", x, wv) + bv
        qh = q.reshape(B, S, N_HEADS, HEAD_DIM)
        kh = k.reshape(B, S, N_HEADS, HEAD_DIM)
        vh = v.reshape(B, S, N_HEADS, HEAD_DIM)
        sc = jnp.einsum("bqhd,bkhd->bhqk", qh, kh) / math.sqrt(HEAD_DIM)
        p = jax.nn.softmax(sc, axis=-1)
        ctx = jnp.einsum("bhqk,bkhd->bqhd", p, vh).reshape(B, S, H)
        attn = jnp.einsum("bsh,hk->bsk", ctx, wo) + bo
        x = _layernorm(x + attn, ln1g, ln1b)
        ff = jnp.maximum(jnp.einsum("bsh,hf->bsf", x, w1) + b1, 0.0)
        ff = jnp.einsum("bsf,fh->bsh", ff, w2) + b2
        x = _layernorm(x + ff, ln2g, ln2b)
        feat = jnp.mean(x, axis=1)
        return feat @ wa + ba, feat @ wvh + bvh


if __name__ == "__main__":
    key = jax.random.PRNGKey(0)
    k_obs, k_par = jax.random.split(key)
    observations = jax.random.normal(k_obs, (B, S, D_OBS), jnp.float32)
    params = init_params(k_par)
    slab = pack_params(params)

    fwd = jax.jit(transformer_policy_forward)
    action_logits, values = fwd(observations, slab)
    jax.block_until_ready((action_logits, values))

    assert action_logits.shape == (B, N_ACT)
    assert values.shape == (B, 1)

    # correctness vs pure-JAX reference (tolerance covers approx-reciprocal softmax)
    ref_logits, ref_values = reference_forward(observations, params)
    assert jnp.allclose(action_logits, ref_logits, atol=1e-2, rtol=1e-2)
    assert jnp.allclose(values, ref_values, atol=1e-2, rtol=1e-2)

    print("KERNEL_OK")
</pallas_src>

<mosaic_0001>
module attributes {stable_mosaic.version = 11 : i64} {
  func.func @policy_kernel(%arg0: i32, %arg1: memref<2x8x16xf32, #tpu.memory_space<vmem>>, %arg2: memref<224x128xf32, #tpu.memory_space<vmem>>, %arg3: memref<2x5xf32, #tpu.memory_space<vmem>>) attributes {dimension_semantics = [#tpu.dimension_semantics<parallel>], iteration_bounds = array<i64: 1>, scalar_prefetch = 0 : i64, scratch_operands = 0 : i64, tpu.core_type = #tpu.core_type<tc>, window_params = [{transform_indices = @transform_0, window_bounds = array<i64: 2, 8, 16>}, {pipeline_mode = #tpu.pipeline_mode<synchronous>, transform_indices = @transform_1, window_bounds = array<i64: 224, 128>}, {transform_indices = @transform_2, window_bounds = array<i64: 2, 5>}]} {
    %c0 = arith.constant 0 : index
    %c0_0 = arith.constant 0 : index
    %c0_1 = arith.constant 0 : index
    %0 = vector.load %arg1[%c0, %c0_0, %c0_1] : memref<2x8x16xf32, #tpu.memory_space<vmem>>, vector<2x8x16xf32>
    %1 = vector.shape_cast %0 : vector<2x8x16xf32> to vector<16x16xf32>
    %c0_2 = arith.constant 0 : index
    %c0_3 = arith.constant 0 : index
    %2 = vector.load %arg2[%c0_2, %c0_3] : memref<224x128xf32, #tpu.memory_space<vmem>>, vector<16x32xf32>
    %cst = arith.constant dense<0.000000e+00> : vector<16x32xf32>
    %3 = tpu.matmul %1, %2, %cst {dimension_numbers = #tpu.dot_dimension_numbers<[1], [0], [0], [1], [0, 0, 1, 1], [], []>} : vector<16x16xf32>, vector<16x32xf32>, vector<16x32xf32> -> vector<16x32xf32>
    %c208 = arith.constant 208 : index
    %c0_4 = arith.constant 0 : index
    %4 = vector.load %arg2[%c208, %c0_4] : memref<224x128xf32, #tpu.memory_space<vmem>>, vector<1x32xf32>
    %5 = vector.broadcast %4 : vector<1x32xf32> to vector<16x32xf32>
    %6 = arith.addf %3, %5 : vector<16x32xf32>
    %c16 = arith.constant 16 : index
    %c0_5 = arith.constant 0 : index
    %7 = vector.load %arg2[%c16, %c0_5] : memref<224x128xf32, #tpu.memory_space<vmem>>, vector<32x96xf32>
    %cst_6 = arith.constant dense<0.000000e+00> : vector<16x96xf32>
    %8 = tpu.matmul %6, %7, %cst_6 {dimension_numbers = #tpu.dot_dimension_numbers<[1], [0], [0], [1], [0, 0, 1, 1], [], []>} : vector<16x32xf32>, vector<32x96xf32>, vector<16x96xf32> -> vector<16x96xf32>
    %c209 = arith.constant 209 : index
    %c0_7 = arith.constant 0 : index
    %9 = vector.load %arg2[%c209, %c0_7] : memref<224x128xf32, #tpu.memory_space<vmem>>, vector<1x96xf32>
    %10 = vector.broadcast %9 : vector<1x96xf32> to vector<16x96xf32>
    %11 = arith.addf %8, %10 : vector<16x96xf32>
    %cst_8 = arith.constant 0.000000e+00 : f32
    %12 = vector.broadcast %cst_8 : f32 to vector<16x32xf32>
    %13 = vector.extract_strided_slice %11 {offsets = [0, 0], sizes = [16, 8], strides = [1, 1]} : vector<16x96xf32> to vector<16x8xf32>
    %14 = vector.shape_cast %13 : vector<16x8xf32> to vector<2x8x8xf32>
    %15 = vector.extract_strided_slice %11 {offsets = [0, 32], sizes = [16, 8], strides = [1, 1]} : vector<16x96xf32> to vector<16x8xf32>
    %16 = vector.shape_cast %15 : vector<16x8xf32> to vector<2x8x8xf32>
    %17 = vector.extract_strided_slice %11 {offsets = [0, 64], sizes = [16, 8], strides = [1, 1]} : vector<16x96xf32> to vector<16x8xf32>
    %18 = vector.shape_cast %17 : vector<16x8xf32> to vector<2x8x8xf32>
    "tpu.trace_start"() <{level = 10 : i32, message = "bqd,bkd->bqk"}> : () -> ()
    %cst_9 = arith.constant dense<0.000000e+00> : vector<2x8x8xf32>
    %19 = tpu.matmul %14, %16, %cst_9 {dimension_numbers = #tpu.dot_dimension_numbers<[2], [2], [1], [1], [0, 0, 0, 1, 1, 1], [0], [0]>} : vector<2x8x8xf32>, vector<2x8x8xf32>, vector<2x8x8xf32> -> vector<2x8x8xf32>
    "tpu.trace_stop"() : () -> ()
    %cst_10 = arith.constant 0.353553385 : f32
    %20 = vector.broadcast %cst_10 : f32 to vector<2x8x8xf32>
    %21 = arith.mulf %19, %20 : vector<2x8x8xf32>
    %cst_11 = arith.constant dense<0xFF800000> : vector<2x8xf32>
    %22 = vector.multi_reduction <maximumf>, %21, %cst_11 [2] : vector<2x8x8xf32> to vector<2x8xf32>
    %23 = vector.shape_cast %22 : vector<2x8xf32> to vector<2x8x1xf32>
    %24 = vector.broadcast %23 : vector<2x8x1xf32> to vector<2x8x8xf32>
    %25 = arith.subf %21, %24 : vector<2x8x8xf32>
    %26 = math.exp %25 : vector<2x8x8xf32>
    %cst_12 = arith.constant dense<0.000000e+00> : vector<2x8xf32>
    %27 = vector.multi_reduction <add>, %26, %cst_12 [2] : vector<2x8x8xf32> to vector<2x8xf32>
    %28 = vector.shape_cast %27 : vector<2x8xf32> to vector<2x8x1xf32>
    %29 = tpu.reciprocal %28 {approx = true} : vector<2x8x1xf32> -> vector<2x8x1xf32>
    "tpu.trace_start"() <{level = 10 : i32, message = "bqk,bkd->bqd"}> : () -> ()
    %cst_13 = arith.constant dense<0.000000e+00> : vector<2x8x8xf32>
    %30 = tpu.matmul %26, %18, %cst_13 {dimension_numbers = #tpu.dot_dimension_numbers<[2], [1], [1], [2], [0, 0, 0, 1, 1, 2], [0], [0]>} : vector<2x8x8xf32>, vector<2x8x8xf32>, vector<2x8x8xf32> -> vector<2x8x8xf32>
    "tpu.trace_stop"() : () -> ()
    %31 = vector.broadcast %29 : vector<2x8x1xf32> to vector<2x8x8xf32>
    %32 = arith.mulf %30, %31 : vector<2x8x8xf32>
    %33 = vector.shape_cast %32 : vector<2x8x8xf32> to vector<16x8xf32>
    %c48 = arith.constant 48 : index
    %c0_14 = arith.constant 0 : index
    %34 = vector.load %arg2[%c48, %c0_14] : memref<224x128xf32, #tpu.memory_space<vmem>>, vector<8x32xf32>
    %cst_15 = arith.constant dense<0.000000e+00> : vector<16x32xf32>
    %35 = tpu.matmul %33, %34, %cst_15 {dimension_numbers = #tpu.dot_dimension_numbers<[1], [0], [0], [1], [0, 0, 1, 1], [], []>} : vector<16x8xf32>, vector<8x32xf32>, vector<16x32xf32> -> vector<16x32xf32>
    %36 = arith.addf %12, %35 : vector<16x32xf32>
    %37 = vector.extract_strided_slice %11 {offsets = [0, 8], sizes = [16, 8], strides = [1, 1]} : vector<16x96xf32> to vector<16x8xf32>
    %38 = vector.shape_cast %37 : vector<16x8xf32> to vector<2x8x8xf32>
    %39 = vector.extract_strided_slice %11 {offsets = [0, 40], sizes = [16, 8], strides = [1, 1]} : vector<16x96xf32> to vector<16x8xf32>
    %40 = vector.shape_cast %39 : vector<16x8xf32> to vector<2x8x8xf32>
    %41 = vector.extract_strided_slice %11 {offsets = [0, 72], sizes = [16, 8], strides = [1, 1]} : vector<16x96xf32> to vector<16x8xf32>
    %42 = vector.shape_cast %41 : vector<16x8xf32> to vector<2x8x8xf32>
    "tpu.trace_start"() <{level = 10 : i32, message = "bqd,bkd->bqk"}> : () -> ()
    %cst_16 = arith.constant dense<0.000000e+00> : vector<2x8x8xf32>
    %43 = tpu.matmul %38, %40, %cst_16 {dimension_numbers = #tpu.dot_dimension_numbers<[2], [2], [1], [1], [0, 0, 0, 1, 1, 1], [0], [0]>} : vector<2x8x8xf32>, vector<2x8x8xf32>, vector<2x8x8xf32> -> vector<2x8x8xf32>
    "tpu.trace_stop"() : () -> ()
    %cst_17 = arith.constant 0.353553385 : f32
    %44 = vector.broadcast %cst_17 : f32 to vector<2x8x8xf32>
    %45 = arith.mulf %43, %44 : vector<2x8x8xf32>
    %cst_18 = arith.constant dense<0xFF800000> : vector<2x8xf32>
    %46 = vector.multi_reduction <maximumf>, %45, %cst_18 [2] : vector<2x8x8xf32> to vector<2x8xf32>
    %47 = vector.shape_cast %46 : vector<2x8xf32> to vector<2x8x1xf32>
    %48 = vector.broadcast %47 : vector<2x8x1xf32> to vector<2x8x8xf32>
    %49 = arith.subf %45, %48 : vector<2x8x8xf32>
    %50 = math.exp %49 : vector<2x8x8xf32>
    %cst_19 = arith.constant dense<0.000000e+00> : vector<2x8xf32>
    %51 = vector.multi_reduction <add>, %50, %cst_19 [2] : vector<2x8x8xf32> to vector<2x8xf32>
    %52 = vector.shape_cast %51 : vector<2x8xf32> to vector<2x8x1xf32>
    %53 = tpu.reciprocal %52 {approx = true} : vector<2x8x1xf32> -> vector<2x8x1xf32>
    "tpu.trace_start"() <{level = 10 : i32, message = "bqk,bkd->bqd"}> : () -> ()
    %cst_20 = arith.constant dense<0.000000e+00> : vector<2x8x8xf32>
    %54 = tpu.matmul %50, %42, %cst_20 {dimension_numbers = #tpu.dot_dimension_numbers<[2], [1], [1], [2], [0, 0, 0, 1, 1, 2], [0], [0]>} : vector<2x8x8xf32>, vector<2x8x8xf32>, vector<2x8x8xf32> -> vector<2x8x8xf32>
    "tpu.trace_stop"() : () -> ()
    %55 = vector.broadcast %53 : vector<2x8x1xf32> to vector<2x8x8xf32>
    %56 = arith.mulf %54, %55 : vector<2x8x8xf32>
    %57 = vector.shape_cast %56 : vector<2x8x8xf32> to vector<16x8xf32>
    %c56 = arith.constant 56 : index
    %c0_21 = arith.constant 0 : index
    %58 = vector.load %arg2[%c56, %c0_21] : memref<224x128xf32, #tpu.memory_space<vmem>>, vector<8x32xf32>
    %cst_22 = arith.constant dense<0.000000e+00> : vector<16x32xf32>
    %59 = tpu.matmul %57, %58, %cst_22 {dimension_numbers = #tpu.dot_dimension_numbers<[1], [0], [0], [1], [0, 0, 1, 1], [], []>} : vector<16x8xf32>, vector<8x32xf32>, vector<16x32xf32> -> vector<16x32xf32>
    %60 = arith.addf %36, %59 : vector<16x32xf32>
    %61 = vector.extract_strided_slice %11 {offsets = [0, 16], sizes = [16, 8], strides = [1, 1]} : vector<16x96xf32> to vector<16x8xf32>
    %62 = vector.shape_cast %61 : vector<16x8xf32> to vector<2x8x8xf32>
    %63 = vector.extract_strided_slice %11 {offsets = [0, 48], sizes = [16, 8], strides = [1, 1]} : vector<16x96xf32> to vector<16x8xf32>
    %64 = vector.shape_cast %63 : vector<16x8xf32> to vector<2x8x8xf32>
    %65 = vector.extract_strided_slice %11 {offsets = [0, 80], sizes = [16, 8], strides = [1, 1]} : vector<16x96xf32> to vector<16x8xf32>
    %66 = vector.shape_cast %65 : vector<16x8xf32> to vector<2x8x8xf32>
    "tpu.trace_start"() <{level = 10 : i32, message = "bqd,bkd->bqk"}> : () -> ()
    %cst_23 = arith.constant dense<0.000000e+00> : vector<2x8x8xf32>
    %67 = tpu.matmul %62, %64, %cst_23 {dimension_numbers = #tpu.dot_dimension_numbers<[2], [2], [1], [1], [0, 0, 0, 1, 1, 1], [0], [0]>} : vector<2x8x8xf32>, vector<2x8x8xf32>, vector<2x8x8xf32> -> vector<2x8x8xf32>
    "tpu.trace_stop"() : () -> ()
    %cst_24 = arith.constant 0.353553385 : f32
    %68 = vector.broadcast %cst_24 : f32 to vector<2x8x8xf32>
    %69 = arith.mulf %67, %68 : vector<2x8x8xf32>
    %cst_25 = arith.constant dense<0xFF800000> : vector<2x8xf32>
    %70 = vector.multi_reduction <maximumf>, %69, %cst_25 [2] : vector<2x8x8xf32> to vector<2x8xf32>
    %71 = vector.shape_cast %70 : vector<2x8xf32> to vector<2x8x1xf32>
    %72 = vector.broadcast %71 : vector<2x8x1xf32> to vector<2x8x8xf32>
    %73 = arith.subf %69, %72 : vector<2x8x8xf32>
    %74 = math.exp %73 : vector<2x8x8xf32>
    %cst_26 = arith.constant dense<0.000000e+00> : vector<2x8xf32>
    %75 = vector.multi_reduction <add>, %74, %cst_26 [2] : vector<2x8x8xf32> to vector<2x8xf32>
    %76 = vector.shape_cast %75 : vector<2x8xf32> to vector<2x8x1xf32>
    %77 = tpu.reciprocal %76 {approx = true} : vector<2x8x1xf32> -> vector<2x8x1xf32>
    "tpu.trace_start"() <{level = 10 : i32, message = "bqk,bkd->bqd"}> : () -> ()
    %cst_27 = arith.constant dense<0.000000e+00> : vector<2x8x8xf32>
    %78 = tpu.matmul %74, %66, %cst_27 {dimension_numbers = #tpu.dot_dimension_numbers<[2], [1], [1], [2], [0, 0, 0, 1, 1, 2], [0], [0]>} : vector<2x8x8xf32>, vector<2x8x8xf32>, vector<2x8x8xf32> -> vector<2x8x8xf32>
    "tpu.trace_stop"() : () -> ()
    %79 = vector.broadcast %77 : vector<2x8x1xf32> to vector<2x8x8xf32>
    %80 = arith.mulf %78, %79 : vector<2x8x8xf32>
    %81 = vector.shape_cast %80 : vector<2x8x8xf32> to vector<16x8xf32>
    %c64 = arith.constant 64 : index
    %c0_28 = arith.constant 0 : index
    %82 = vector.load %arg2[%c64, %c0_28] : memref<224x128xf32, #tpu.memory_space<vmem>>, vector<8x32xf32>
    %cst_29 = arith.constant dense<0.000000e+00> : vector<16x32xf32>
    %83 = tpu.matmul %81, %82, %cst_29 {dimension_numbers = #tpu.dot_dimension_numbers<[1], [0], [0], [1], [0, 0, 1, 1], [], []>} : vector<16x8xf32>, vector<8x32xf32>, vector<16x32xf32> -> vector<16x32xf32>
    %84 = arith.addf %60, %83 : vector<16x32xf32>
    %85 = vector.extract_strided_slice %11 {offsets = [0, 24], sizes = [16, 8], strides = [1, 1]} : vector<16x96xf32> to vector<16x8xf32>
    %86 = vector.shape_cast %85 : vector<16x8xf32> to vector<2x8x8xf32>
    %87 = vector.extract_strided_slice %11 {offsets = [0, 56], sizes = [16, 8], strides = [1, 1]} : vector<16x96xf32> to vector<16x8xf32>
    %88 = vector.shape_cast %87 : vector<16x8xf32> to vector<2x8x8xf32>
    %89 = vector.extract_strided_slice %11 {offsets = [0, 88], sizes = [16, 8], strides = [1, 1]} : vector<16x96xf32> to vector<16x8xf32>
    %90 = vector.shape_cast %89 : vector<16x8xf32> to vector<2x8x8xf32>
    "tpu.trace_start"() <{level = 10 : i32, message = "bqd,bkd->bqk"}> : () -> ()
    %cst_30 = arith.constant dense<0.000000e+00> : vector<2x8x8xf32>
    %91 = tpu.matmul %86, %88, %cst_30 {dimension_numbers = #tpu.dot_dimension_numbers<[2], [2], [1], [1], [0, 0, 0, 1, 1, 1], [0], [0]>} : vector<2x8x8xf32>, vector<2x8x8xf32>, vector<2x8x8xf32> -> vector<2x8x8xf32>
    "tpu.trace_stop"() : () -> ()
    %cst_31 = arith.constant 0.353553385 : f32
    %92 = vector.broadcast %cst_31 : f32 to vector<2x8x8xf32>
    %93 = arith.mulf %91, %92 : vector<2x8x8xf32>
    %cst_32 = arith.constant dense<0xFF800000> : vector<2x8xf32>
    %94 = vector.multi_reduction <maximumf>, %93, %cst_32 [2] : vector<2x8x8xf32> to vector<2x8xf32>
    %95 = vector.shape_cast %94 : vector<2x8xf32> to vector<2x8x1xf32>
    %96 = vector.broadcast %95 : vector<2x8x1xf32> to vector<2x8x8xf32>
    %97 = arith.subf %93, %96 : vector<2x8x8xf32>
    %98 = math.exp %97 : vector<2x8x8xf32>
    %cst_33 = arith.constant dense<0.000000e+00> : vector<2x8xf32>
    %99 = vector.multi_reduction <add>, %98, %cst_33 [2] : vector<2x8x8xf32> to vector<2x8xf32>
    %100 = vector.shape_cast %99 : vector<2x8xf32> to vector<2x8x1xf32>
    %101 = tpu.reciprocal %100 {approx = true} : vector<2x8x1xf32> -> vector<2x8x1xf32>
    "tpu.trace_start"() <{level = 10 : i32, message = "bqk,bkd->bqd"}> : () -> ()
    %cst_34 = arith.constant dense<0.000000e+00> : vector<2x8x8xf32>
    %102 = tpu.matmul %98, %90, %cst_34 {dimension_numbers = #tpu.dot_dimension_numbers<[2], [1], [1], [2], [0, 0, 0, 1, 1, 2], [0], [0]>} : vector<2x8x8xf32>, vector<2x8x8xf32>, vector<2x8x8xf32> -> vector<2x8x8xf32>
    "tpu.trace_stop"() : () -> ()
    %103 = vector.broadcast %101 : vector<2x8x1xf32> to vector<2x8x8xf32>
    %104 = arith.mulf %102, %103 : vector<2x8x8xf32>
    %105 = vector.shape_cast %104 : vector<2x8x8xf32> to vector<16x8xf32>
    %c72 = arith.constant 72 : index
    %c0_35 = arith.constant 0 : index
    %106 = vector.load %arg2[%c72, %c0_35] : memref<224x128xf32, #tpu.memory_space<vmem>>, vector<8x32xf32>
    %cst_36 = arith.constant dense<0.000000e+00> : vector<16x32xf32>
    %107 = tpu.matmul %105, %106, %cst_36 {dimension_numbers = #tpu.dot_dimension_numbers<[1], [0], [0], [1], [0, 0, 1, 1], [], []>} : vector<16x8xf32>, vector<8x32xf32>, vector<16x32xf32> -> vector<16x32xf32>
    %108 = arith.addf %84, %107 : vector<16x32xf32>
    %c210 = arith.constant 210 : index
    %c0_37 = arith.constant 0 : index
    %109 = vector.load %arg2[%c210, %c0_37] : memref<224x128xf32, #tpu.memory_space<vmem>>, vector<1x32xf32>
    %110 = vector.broadcast %109 : vector<1x32xf32> to vector<16x32xf32>
    %111 = arith.addf %108, %110 : vector<16x32xf32>
    %112 = arith.addf %6, %111 : vector<16x32xf32>
    %c211 = arith.constant 211 : index
    %c0_38 = arith.constant 0 : index
    %113 = vector.load %arg2[%c211, %c0_38] : memref<224x128xf32, #tpu.memory_space<vmem>>, vector<1x32xf32>
    %c212 = arith.constant 212 : index
    %c0_39 = arith.constant 0 : index
    %114 = vector.load %arg2[%c212, %c0_39] : memref<224x128xf32, #tpu.memory_space<vmem>>, vector<1x32xf32>
    %cst_40 = arith.constant dense<0.000000e+00> : vector<16xf32>
    %115 = vector.multi_reduction <add>, %112, %cst_40 [1] : vector<16x32xf32> to vector<16xf32>
    %116 = vector.shape_cast %115 : vector<16xf32> to vector<16x1xf32>
    %cst_41 = arith.constant 3.200000e+01 : f32
    %117 = vector.broadcast %cst_41 : f32 to vector<16x1xf32>
    %118 = arith.divf %116, %117 : vector<16x1xf32>
    %119 = vector.broadcast %118 : vector<16x1xf32> to vector<16x32xf32>
    %120 = arith.subf %112, %119 : vector<16x32xf32>
    %121 = arith.mulf %120, %120 : vector<16x32xf32>
    %cst_42 = arith.constant dense<0.000000e+00> : vector<16xf32>
    %122 = vector.multi_reduction <add>, %121, %cst_42 [1] : vector<16x32xf32> to vector<16xf32>
    %123 = vector.shape_cast %122 : vector<16xf32> to vector<16x1xf32>
    %cst_43 = arith.constant 3.200000e+01 : f32
    %124 = vector.broadcast %cst_43 : f32 to vector<16x1xf32>
    %125 = arith.divf %123, %124 : vector<16x1xf32>
    %126 = vector.broadcast %118 : vector<16x1xf32> to vector<16x32xf32>
    %127 = arith.subf %112, %126 : vector<16x32xf32>
    %cst_44 = arith.constant 9.99999974E-6 : f32
    %128 = vector.broadcast %cst_44 : f32 to vector<16x1xf32>
    %129 = arith.addf %125, %128 : vector<16x1xf32>
    %130 = math.rsqrt %129 : vector<16x1xf32>
    %131 = vector.broadcast %130 : vector<16x1xf32> to vector<16x32xf32>
    %132 = arith.mulf %127, %131 : vector<16x32xf32>
    %133 = vector.broadcast %113 : vector<1x32xf32> to vector<16x32xf32>
    %134 = arith.mulf %132, %133 : vector<16x32xf32>
    %135 = vector.broadcast %114 : vector<1x32xf32> to vector<16x32xf32>
    %136 = arith.addf %134, %135 : vector<16x32xf32>
    %c80 = arith.constant 80 : index
    %c0_45 = arith.constant 0 : index
    %137 = vector.load %arg2[%c80, %c0_45] : memref<224x128xf32, #tpu.memory_space<vmem>>, vector<32x64xf32>
    %cst_46 = arith.constant dense<0.000000e+00> : vector<16x64xf32>
    %138 = tpu.matmul %136, %137, %cst_46 {dimension_numbers = #tpu.dot_dimension_numbers<[1], [0], [0], [1], [0, 0, 1, 1], [], []>} : vector<16x32xf32>, vector<32x64xf32>, vector<16x64xf32> -> vector<16x64xf32>
    %c213 = arith.constant 213 : index
    %c0_47 = arith.constant 0 : index
    %139 = vector.load %arg2[%c213, %c0_47] : memref<224x128xf32, #tpu.memory_space<vmem>>, vector<1x64xf32>
    %140 = vector.broadcast %139 : vector<1x64xf32> to vector<16x64xf32>
    %141 = arith.addf %138, %140 : vector<16x64xf32>
    %cst_48 = arith.constant 0.000000e+00 : f32
    %142 = vector.broadcast %cst_48 : f32 to vector<16x64xf32>
    %143 = arith.maximumf %141, %142 : vector<16x64xf32>
    %c112 = arith.constant 112 : index
    %c0_49 = arith.constant 0 : index
    %144 = vector.load %arg2[%c112, %c0_49] : memref<224x128xf32, #tpu.memory_space<vmem>>, vector<64x32xf32>
    %cst_50 = arith.constant dense<0.000000e+00> : vector<16x32xf32>
    %145 = tpu.matmul %143, %144, %cst_50 {dimension_numbers = #tpu.dot_dimension_numbers<[1], [0], [0], [1], [0, 0, 1, 1], [], []>} : vector<16x64xf32>, vector<64x32xf32>, vector<16x32xf32> -> vector<16x32xf32>
    %c214 = arith.constant 214 : index
    %c0_51 = arith.constant 0 : index
    %146 = vector.load %arg2[%c214, %c0_51] : memref<224x128xf32, #tpu.memory_space<vmem>>, vector<1x32xf32>
    %147 = vector.broadcast %146 : vector<1x32xf32> to vector<16x32xf32>
    %148 = arith.addf %145, %147 : vector<16x32xf32>
    %149 = arith.addf %136, %148 : vector<16x32xf32>
    %c215 = arith.constant 215 : index
    %c0_52 = arith.constant 0 : index
    %150 = vector.load %arg2[%c215, %c0_52] : memref<224x128xf32, #tpu.memory_space<vmem>>, vector<1x32xf32>
    %c216 = arith.constant 216 : index
    %c0_53 = arith.constant 0 : index
    %151 = vector.load %arg2[%c216, %c0_53] : memref<224x128xf32, #tpu.memory_space<vmem>>, vector<1x32xf32>
    %cst_54 = arith.constant dense<0.000000e+00> : vector<16xf32>
    %152 = vector.multi_reduction <add>, %149, %cst_54 [1] : vector<16x32xf32> to vector<16xf32>
    %153 = vector.shape_cast %152 : vector<16xf32> to vector<16x1xf32>
    %cst_55 = arith.constant 3.200000e+01 : f32
    %154 = vector.broadcast %cst_55 : f32 to vector<16x1xf32>
    %155 = arith.divf %153, %154 : vector<16x1xf32>
    %156 = vector.broadcast %155 : vector<16x1xf32> to vector<16x32xf32>
    %157 = arith.subf %149, %156 : vector<16x32xf32>
    %158 = arith.mulf %157, %157 : vector<16x32xf32>
    %cst_56 = arith.constant dense<0.000000e+00> : vector<16xf32>
    %159 = vector.multi_reduction <add>, %158, %cst_56 [1] : vector<16x32xf32> to vector<16xf32>
    %160 = vector.shape_cast %159 : vector<16xf32> to vector<16x1xf32>
    %cst_57 = arith.constant 3.200000e+01 : f32
    %161 = vector.broadcast %cst_57 : f32 to vector<16x1xf32>
    %162 = arith.divf %160, %161 : vector<16x1xf32>
    %163 = vector.broadcast %155 : vector<16x1xf32> to vector<16x32xf32>
    %164 = arith.subf %149, %163 : vector<16x32xf32>
    %cst_58 = arith.constant 9.99999974E-6 : f32
    %165 = vector.broadcast %cst_58 : f32 to vector<16x1xf32>
    %166 = arith.addf %162, %165 : vector<16x1xf32>
    %167 = math.rsqrt %166 : vector<16x1xf32>
    %168 = vector.broadcast %167 : vector<16x1xf32> to vector<16x32xf32>
    %169 = arith.mulf %164, %168 : vector<16x32xf32>
    %170 = vector.broadcast %150 : vector<1x32xf32> to vector<16x32xf32>
    %171 = arith.mulf %169, %170 : vector<16x32xf32>
    %172 = vector.broadcast %151 : vector<1x32xf32> to vector<16x32xf32>
    %173 = arith.addf %171, %172 : vector<16x32xf32>
    %174 = vector.shape_cast %173 : vector<16x32xf32> to vector<2x8x32xf32>
    %cst_59 = arith.constant dense<0.000000e+00> : vector<2x32xf32>
    %175 = vector.multi_reduction <add>, %174, %cst_59 [1] : vector<2x8x32xf32> to vector<2x32xf32>
    %cst_60 = arith.constant 8.000000e+00 : f32
    %176 = vector.broadcast %cst_60 : f32 to vector<2x32xf32>
    %177 = arith.divf %175, %176 : vector<2x32xf32>
    %c176 = arith.constant 176 : index
    %c0_61 = arith.constant 0 : index
    %178 = vector.load %arg2[%c176, %c0_61] : memref<224x128xf32, #tpu.memory_space<vmem>>, vector<32x5xf32>
    %cst_62 = arith.constant dense<0.000000e+00> : vector<2x5xf32>
    %179 = tpu.matmul %177, %178, %cst_62 {dimension_numbers = #tpu.dot_dimension_numbers<[1], [0], [0], [1], [0, 0, 1, 1], [], []>} : vector<2x32xf32>, vector<32x5xf32>, vector<2x5xf32> -> vector<2x5xf32>
    %c217 = arith.constant 217 : index
    %c0_63 = arith.constant 0 : index
    %180 = vector.load %arg2[%c217, %c0_63] : memref<224x128xf32, #tpu.memory_space<vmem>>, vector<1x5xf32>
    %181 = vector.broadcast %180 : vector<1x5xf32> to vector<2x5xf32>
    %182 = arith.addf %179, %181 : vector<2x5xf32>
    %c0_64 = arith.constant 0 : index
    %c0_65 = arith.constant 0 : index
    %183 = vector.load %arg3[%c0_64, %c0_65] : memref<2x5xf32, #tpu.memory_space<vmem>>, vector<2x5xf32>
    tpu.vector_store %arg3[%c0_64, %c0_65], %182 {strides = array<i32>} : memref<2x5xf32, #tpu.memory_space<vmem>>, vector<2x5xf32>,
    return
  }
  func.func @transform_0(%arg0: i32) -> (i32, i32, i32) {
    %c0_i32 = arith.constant 0 : i32
    %c0_i32_0 = arith.constant 0 : i32
    %c0_i32_1 = arith.constant 0 : i32
    return %arg0, %c0_i32, %c0_i32_0 : i32, i32, i32
  }
  func.func @transform_1(%arg0: i32) -> (i32, i32) {
    %c0_i32 = arith.constant 0 : i32
    %c0_i32_0 = arith.constant 0 : i32
    %c0_i32_1 = arith.constant 0 : i32
    return %c0_i32, %c0_i32_0 : i32, i32
  }
  func.func @transform_2(%arg0: i32) -> (i32, i32) {
    %c0_i32 = arith.constant 0 : i32
    %c0_i32_0 = arith.constant 0 : i32
    return %arg0, %c0_i32 : i32, i32
  }
}

</mosaic_0001>

<bundles_post_ra>
// kernel: transformer_policy_forward.1
= control target key start
LH: loop header
LB: loop body
LE: loop exit
PB: predicated region body
PF: predicated region fallthrough
CT: control target
= control target key end

     0   :  { %7 = vsyncpa [#allocation3], 0  ;;  %s2860_s0 = inlined_call_operand.hbm [shape: f32[2,8,16], index: 0, kind: input, shape index: {}]   ;;  %s2861_s1 = inlined_call_operand.hbm [shape: f32[224,128], index: 1, kind: input, shape index: {}]   ;;  %s2862_s2 = inlined_call_operand.vmem [shape: f32[2,5], index: 2, kind: output, shape index: {}]  }
   0x1   :  { %8 = vsyncpa [#allocation5], 0  ;;  %s2655_s9 = smov [#allocation2]  }
   0x2   :  { %s14_s10 = sshll.u32 %s2655_s9, 4  ;;  %s15_s10 = int_to_ptr.vmem [resolvable:$true] %s14_s10 }
   0x3   :  { %s2619_s11 = scalar_lea.vmem %s15_s10, 256  ;;  %p2624_p1 = scmp.lt.s32.totalorder %s15_s10, %s15_s10 }
   0x4   :  { %p2620_p0 = scmp.ne.s32.totalorder %s15_s10, %s2619_s11  ;;  %p2625_p2 = scmp.lt.s32.totalorder %s2619_s11, %s2619_s11 }
   0x6   :  { %p2626_p3 = por %p2625_p2, %p2624_p1 }
   0x8   :  { %p2627_p4 = pnand %p2626_p3, %p2620_p0 }
   0xa   :  { %2630 = shalt.err (!%p2627_p4)
}
   0xb   :  { %s2656_s12 = smov 128   ;;  %s2657_s13 = smov 8  }
   0xc   :  { %20 = dma.hbm_to_vmem [thread:$0]  %s2860_s0, 256, %s15_s10, [#allocation3], %s2656_s12, %s2656_s12, %s2657_s13  }
   0xd   :  { %s2658_s16 = smov [#allocation4]  }
   0xe   :  { %s26_s17 = sshll.u32 %s2658_s16, 4  ;;  %s27_s17 = int_to_ptr.vmem [resolvable:$true] %s26_s17 }
   0xf   :  { %s2639_s18 = scalar_lea.vmem %s27_s17, 3584  ;;  %p2644_p6 = scmp.lt.s32.totalorder %s27_s17, %s27_s17 }
  0x10   :  { %p2640_p5 = scmp.ne.s32.totalorder %s27_s17, %s2639_s18  ;;  %p2645_p7 = scmp.lt.s32.totalorder %s2639_s18, %s2639_s18 }
  0x12   :  { %p2646_p8 = por %p2645_p7, %p2644_p6 }
  0x14   :  { %p2647_p9 = pnand %p2646_p8, %p2640_p5 }
  0x16   :  { %2650 = shalt.err (!%p2647_p9)
}
  0x17   :  { %32 = dma.hbm_to_vmem [thread:$0]  %s2861_s1, 3584, %s27_s17, [#allocation5], %s2656_s12, %s2656_s12, %s2657_s13  }
  0x18   :  { %2651 = dma.done.wait [#allocation3], 256  }
  0x19   :  { %2652 = vsyncadd [#allocation3], 4294967040 }
  0x1a   :  { %2653 = dma.done.wait [#allocation5], 3584  }
  0x1b   :  { %2654 = vsyncadd [#allocation5], 4294963712  ;;  %vm48_vm0 = vcmask 130048   ;;  %v42_v0 = vld [vmem:[#allocation4 + $0x8] sm:$0xff]  ;;  %v41_v1 = vld [vmem:[#allocation4] sm:$0xff]  ;;  %vm139_vm1 = vcmask 261120  }
  0x1c   :  { %v39_v2 = vld [vmem:[#allocation2] sm:$0xff]  ;;  %2395 = vmatprep.subr.mxu0 %v42_v0  ;;  %v133_v3 = vld [vmem:[#allocation4 + $0x28] sm:$0xff]  ;;  %v40_v4 = vld [vmem:[#allocation2 + $0x8] sm:$0xff]  ;;  %v2659_v13 = vmov 0.0   ;;  %vm2660_vm2 = vmmov 0   ;;  %s2661_s0 = smov 96  }
  0x1d   :  { %2399 = vmatprep.mubr.msk.f32.mxu0 %vm48_vm0, %v39_v2  ;;  %2396 = vmatpush3.msra.mxu0 %v42_v0  ;;  %v132_v5 = vld [vmem:[#allocation4 + $0x20] sm:$0xff]  ;;  %v131_v6 = vld [vmem:[#allocation4 + $0x18] sm:$0xff]  ;;  %v130_v7 = vld [vmem:[#allocation4 + $0x10] sm:$0xff]  ;;  %s2662_s1 = smov 64   ;;  %s2663_s21 = smov 88   ;;  %vm224_vm3 = vcmask 64512  }
  0x1e   :  { %2402 = vmatprep.subr.mxu1 %v133_v3  ;;  %2397 = vmatprep.subr.mxu0 %v41_v1  ;;  %v2269_v9 = vld [vmem:[#allocation4 + $0xd0] ss:$0 sm:$0xff]  ;;  %v2272_v15 = vld [vmem:[#allocation4 + $0xd1] ss:$0 sm:$0xff]  ;;  %s2664_s22 = smov 120   ;;  %s2665_s23 = smov 56  }
  0x1f   :  { %2403 = vmatpush3.msra.mxu1 %v133_v3  ;;  %2398 = vmatpush3.msra.mxu0 %v41_v1  ;;  %v552_v60 = vld [vmem:[#allocation4 + $0x30] sm:$0xff]  ;;  %s2666_s24 = smov 80   ;;  %s2667_s25 = smov 112   ;;  %vm2035_vm4 = vcmask 523264   ;;  %vm2187_vm5 = vcmask 1041409   ;;  %vm2261_vm6 = vcmask 33792  }
  0x20   :  { %2400 = vmatmul.mubr.msk.f32.vlgmr.msra.gmra.mxu0 %vm48_vm0, %v40_v4  ;;  %2404 = vmatprep.subr.mxu1 %v132_v5  ;;  %s2668_s26 = smov 48   ;;  %s2669_s27 = smov 72  }
  0x21   :  { %2405 = vmatpush3.msra.mxu1 %v132_v5  ;;  %2413 = vmatprep.subr.mxu0 %v2659_v13  ;;  %s2670_s28 = smov 104   ;;  %s2671_s29 = smov 40  }
  0x22   :  { %2406 = vmatprep.subr.mxu1 %v131_v6  ;;  %2415 = vmatprep.mubr.msk.f32.mxu0 %vm2660_vm2, %v2659_v13 }
  0x23   :  { %2407 = vmatpush3.msra.mxu1 %v131_v6 }
  0x24   :  { %2408 = vmatprep.subr.mxu1 %v130_v7 }
  0x25   :  { %2409 = vmatpush3.msra.mxu1 %v130_v7 }
  0x26   :  { %2423 = vmatprep.subr.mxu1 %v2659_v13 }
  0xe0   :  { %v2401_v8 = vpop.f32.mrf.mxu0 }
  0xe1   :  { %v2695_v12 = vadd.f32 %v2401_v8, %v2269_v9 }
  0xe2   :  { %v121_v10 = vpop.f32.mrf.mxu0 }
  0xe3   :  { %v2693_v11 = vadd.f32 %v2269_v9, %v121_v10 }
  0xe5   :  { %2410 = vmatprep.mubr.msk.f32.mxu1 %vm139_vm1, %v2693_v11 }
  0xe6   :  { %2411 = vmatmul.mubr.msk.f32.vlgmr.msra.gmra.mxu1 %vm139_vm1, %v2695_v12 }
  0xe7   :  { %2425 = vmatprep.mubr.msk.f32.mxu1 %vm2660_vm2, %v2659_v13 }
 0x1a6   :  { %v2412_v14 = vpop.f32.mrf.mxu1 }
 0x1a7   :  { %v2710_v18 = vadd.f32 %v2412_v14, %v2272_v15 }
 0x1a8   :  { %v212_v16 = vpop.f32.mrf.mxu1 }
 0x1a9   :  { %v2707_v17 = vadd.f32 %v2272_v15, %v212_v16  ;;  %v885_v15 = vld [vmem:[#allocation4 + $0x38] sm:$0xff] }
 0x1ab   :  { %222 = vrot.lane.b32.xlu0 %v2707_v17, %s2661_s0 }
 0x1af   :  { %300 = vrot.lane.b32.xlu0 %v2710_v18, %s2661_s0 }
 0x1b3   :  { %398 = vrot.lane.b32.xlu0 %v2707_v17, %s2662_s1 }
 0x1b7   :  { %555 = vrot.lane.b32.xlu0 %v2707_v17, %s2663_s21 }
 0x1bb   :  { %633 = vrot.lane.b32.xlu0 %v2710_v18, %s2663_s21 }
 0x1bf   :  { %553 = vrot.lane.b32.xlu0 %v2707_v17, %s2664_s22 }
 0x1c3   :  { %631 = vrot.lane.b32.xlu0 %v2710_v18, %s2664_s22 }
 0x21d   :  { %v223_v19 = vpop.permute.xlu0 %222 }
 0x21e   :  { %2414 = vmatpush3.xpose.msk.msra.mxu0 %vm224_vm3, %v223_v19 }
 0x21f   :  { %2418 = vmatprep.subr.mxu0 %v2659_v13 }
 0x221   :  { %2416 = vmatmul.mubr.msk.f32.vlgmr.msra.gmra.mxu0 %vm224_vm3, %v2707_v17  ;;  %v301_v20 = vpop.permute.xlu0 %300 }
 0x222   :  { %2419 = vmatpush3.xpose.msk.msra.mxu0 %vm224_vm3, %v301_v20  ;;  %2420 = vmatprep.mubr.msk.f32.mxu0 %vm2660_vm2, %v2659_v13 }
 0x223   :  { %2428 = vmatprep.subr.mxu0 %v2659_v13 }
 0x225   :  { %2421 = vmatmul.mubr.msk.f32.vlgmr.msra.gmra.mxu0 %vm224_vm3, %v2710_v18  ;;  %v399_v21 = vpop.permute.xlu0 %398 }
 0x226   :  { %2424 = vmatpush3.msra.mxu1 %v399_v21  ;;  %2430 = vmatprep.mubr.msk.f32.mxu0 %vm2660_vm2, %v2659_v13 }
 0x227   :  { %2433 = vmatprep.subr.mxu1 %v2659_v13 }
 0x229   :  { %v556_v36 = vpop.permute.xlu0 %555 }
 0x22d   :  { %v634_v38 = vpop.permute.xlu0 %633 }
 0x231   :  { %v554_v40 = vpop.permute.xlu0 %553 }
 0x235   :  { %v632_v42 = vpop.permute.xlu0 %631 }
 0x2e1   :  { %v295_v22 = vpop.f32.mrf.mxu0 }
 0x2e2   :  { %v376_v23 = vmul.f32 0.35355338, %v295_v22 }
 0x2e3   :  { %v2417_v24 = vpop.f32.mrf.mxu0 }
 0x2e4   :  { %v378_v25 = vsel %vm224_vm3, %v376_v23, -inf }
 0x2e5   :  { %379 = vmax.xlane.f32.xlu1 %v378_v25  ;;  %v372_v26 = vpop.f32.mrf.mxu0 }
 0x2e6   :  { %v377_v27 = vmul.f32 0.35355338, %v372_v26 }
 0x2e7   :  { %v2422_v28 = vpop.f32.mrf.mxu0 }
 0x2e8   :  { %v381_v29 = vsel %vm224_vm3, %v377_v27, -inf }
 0x2e9   :  { %382 = vmax.xlane.f32.xlu1 %v381_v29 }
 0x2fa   :  { %474 = vrot.lane.b32.xlu1 %v2710_v18, %s2662_s1 }
 0x36e   :  { %v380_v30 = vpop.xlane.xlu1 %379 }
 0x36f   :  { %v384_v31 = vsub.f32 %v376_v23, %v380_v30 }
 0x371   :  { %v386_v32 = vmul.f32 1.442695, %v384_v31 }
 0x372   :  { %v383_v33 = vpop.xlane.xlu1 %382 }
 0x373   :  { %2571 = vpow2.f32 %v386_v32  ;;  %v385_v34 = vsub.f32 %v377_v27, %v383_v33 }
 0x375   :  { %v388_v35 = vmul.f32 1.442695, %v385_v34 }
 0x376   :  { %v475_v37 = vpop.permute.xlu1 %474 }
 0x377   :  { %2573 = vpow2.f32 %v388_v35  ;;  %2429 = vmatpush3.msra.mxu0 %v475_v37 }
 0x378   :  { %2438 = vmatprep.subr.mxu0 %v2659_v13 }
 0x380   :  { %v2572_v39 = vpop.eup %2571 }
 0x381   :  { %2426 = vmatmul.mubr.msk.f32.vlgmr.msra.gmra.mxu1 %vm224_vm3, %v2572_v39  ;;  %v390_v56 = vsel %vm224_vm3, %v2572_v39, 0.0 }
 0x382   :  { %2434 = vmatpush3.xpose.msk.msra.mxu1 %vm224_vm3, %v556_v36  ;;  %2435 = vmatprep.mubr.msk.f32.mxu1 %vm2660_vm2, %v2659_v13 }
 0x383   :  { %2443 = vmatprep.subr.mxu1 %v2659_v13 }
 0x384   :  { %v2574_v41 = vpop.eup %2573 }
 0x385   :  { %2431 = vmatmul.mubr.msk.f32.vlgmr.msra.gmra.mxu0 %vm224_vm3, %v2574_v41  ;;  %2436 = vmatmul.mubr.msk.f32.vlgmr.msra.gmra.mxu1 %vm224_vm3, %v554_v40  ;;  %v393_v55 = vsel %vm224_vm3, %v2574_v41, 0.0 }
 0x386   :  { %2439 = vmatpush3.xpose.msk.msra.mxu0 %vm224_vm3, %v634_v38  ;;  %2440 = vmatprep.mubr.msk.f32.mxu0 %vm2660_vm2, %v2659_v13 }
 0x387   :  { %2448 = vmatprep.subr.mxu0 %v2659_v13  ;;  %2445 = vmatprep.mubr.msk.f32.mxu1 %vm2660_vm2, %v2659_v13 }
 0x389   :  { %2441 = vmatmul.mubr.msk.f32.vlgmr.msra.gmra.mxu0 %vm224_vm3, %v632_v42 }
 0x38a   :  { %2450 = vmatprep.mubr.msk.f32.mxu0 %vm2660_vm2, %v2659_v13 }
 0x441   :  { %v470_v43 = vpop.f32.mrf.mxu1 }
 0x443   :  { %v2427_v44 = vpop.f32.mrf.mxu1 }
 0x445   :  { %v546_v45 = vpop.f32.mrf.mxu0  ;;  %v627_v46 = vpop.f32.mrf.mxu1 }
 0x446   :  { %v709_v47 = vmul.f32 0.35355338, %v627_v46 }
 0x447   :  { %v2432_v48 = vpop.f32.mrf.mxu0  ;;  %v2437_v49 = vpop.f32.mrf.mxu1 }
 0x448   :  { %v711_v50 = vsel %vm224_vm3, %v709_v47, -inf }
 0x449   :  { %712 = vmax.xlane.f32.xlu1 %v711_v50  ;;  %v705_v51 = vpop.f32.mrf.mxu0 }
 0x44a   :  { %v710_v52 = vmul.f32 0.35355338, %v705_v51 }
 0x44b   :  { %v2442_v53 = vpop.f32.mrf.mxu0 }
 0x44c   :  { %v714_v54 = vsel %vm224_vm3, %v710_v52, -inf }
 0x44d   :  { %715 = vmax.xlane.f32.xlu0 %v714_v54 }
 0x45a   :  { %807 = vrot.lane.b32.xlu1 %v2710_v18, %s2665_s23 }
 0x463   :  { %731 = vrot.lane.b32.xlu0 %v2707_v17, %s2665_s23 }
 0x47e   :  { %394 = vadd.xlane.f32.xlu1 %v393_v55 }
 0x482   :  { %391 = vadd.xlane.f32.xlu0 %v390_v56 }
 0x4d2   :  { %v713_v57 = vpop.xlane.xlu1 %712 }
 0x4d3   :  { %v717_v58 = vsub.f32 %v709_v47, %v713_v57  ;;  %v1380_v57 = vld [vmem:[#allocation4 + $0x40] sm:$0xff] }
 0x4d5   :  { %v719_v59 = vmul.f32 1.442695, %v717_v58 }
 0x4d6   :  { %v808_v61 = vpop.permute.xlu1 %807  ;;  %v716_v62 = vpop.xlane.xlu0 %715 }
 0x4d7   :  { %2575 = vpow2.f32 %v719_v59  ;;  %v718_v63 = vsub.f32 %v710_v52, %v716_v62  ;;  %2449 = vmatpush3.msra.mxu0 %v808_v61 }
 0x4d8   :  { %2458 = vmatprep.subr.mxu0 %v552_v60 }
 0x4d9   :  { %v721_v0 = vmul.f32 1.442695, %v718_v63 }
 0x4da   :  { %v732_v1 = vpop.permute.xlu0 %731 }
 0x4db   :  { %2577 = vpow2.f32 %v721_v0  ;;  %2444 = vmatpush3.msra.mxu1 %v732_v1 }
 0x4dc   :  { %2453 = vmatprep.subr.mxu1 %v885_v15 }
 0x4e4   :  { %v2576_v2 = vpop.eup %2575 }
 0x4e5   :  { %2446 = vmatmul.mubr.msk.f32.vlgmr.msra.gmra.mxu1 %vm224_vm3, %v2576_v2  ;;  %v723_v3 = vsel %vm224_vm3, %v2576_v2, 0.0 }
 0x4e6   :  { %724 = vadd.xlane.f32.xlu1 %v723_v3  ;;  %2454 = vmatpush3.msra.mxu1 %v885_v15 }
 0x4e7   :  { %2463 = vmatprep.subr.mxu1 %v2659_v13 }
 0x4e8   :  { %v2578_v4 = vpop.eup %2577 }
 0x4e9   :  { %2451 = vmatmul.mubr.msk.f32.vlgmr.msra.gmra.mxu0 %vm224_vm3, %v2578_v4  ;;  %v726_v5 = vsel %vm224_vm3, %v2578_v4, 0.0 }
 0x4ea   :  { %727 = vadd.xlane.f32.xlu0 %v726_v5  ;;  %2459 = vmatpush3.msra.mxu0 %v552_v60 }
 0x4eb   :  { %2468 = vmatprep.subr.mxu0 %v2659_v13 }
 0x4f7   :  { %1128 = vrot.lane.b32.xlu1 %v2710_v18, %s2666_s24 }
 0x4fb   :  { %1048 = vrot.lane.b32.xlu1 %v2707_v17, %s2667_s25 }
 0x500   :  { %1050 = vrot.lane.b32.xlu0 %v2707_v17, %s2666_s24 }
 0x504   :  { %1126 = vrot.lane.b32.xlu0 %v2710_v18, %s2667_s25 }
 0x507   :  { %v395_v6 = vpop.xlane.xlu1 %394 }
 0x508   :  { %2579 = vrcp.f32 %v395_v6 }
 0x50b   :  { %v392_v7 = vpop.xlane.xlu0 %391 }
 0x50c   :  { %2581 = vrcp.f32 %v392_v7 }
 0x515   :  { %v2580_v8 = vpop.eup %2579 }
 0x516   :  { %v551_v14 = vmul.f32 %v2580_v8, %v546_v45 }
 0x519   :  { %v2582_v9 = vpop.eup %2581 }
 0x51a   :  { %v550_v10 = vmul.f32 %v2582_v9, %v470_v43 }
 0x51c   :  { %2460 = vmatprep.mubr.msk.f32.mxu0 %vm224_vm3, %v550_v10 }
 0x51d   :  { %2461 = vmatmul.mubr.msk.f32.vlgmr.msra.gmra.mxu0 %vm224_vm3, %v551_v14 }
 0x51e   :  { %2470 = vmatprep.mubr.msk.f32.mxu0 %vm2660_vm2, %v2659_v13 }
 0x56f   :  { %v725_v16 = vpop.xlane.xlu1 %724 }
 0x570   :  { %2583 = vrcp.f32 %v725_v16 }
 0x573   :  { %v1129_v19 = vpop.permute.xlu1 %1128  ;;  %v728_v20 = vpop.xlane.xlu0 %727 }
 0x574   :  { %2469 = vmatpush3.xpose.msk.msra.mxu0 %vm224_vm3, %v1129_v19  ;;  %2585 = vrcp.f32 %v728_v20 }
 0x575   :  { %2478 = vmatprep.subr.mxu0 %v2659_v13 }
 0x577   :  { %v1051_v21 = vpop.permute.xlu0 %1050  ;;  %v1049_v31 = vpop.permute.xlu1 %1048 }
 0x57b   :  { %v1127_v22 = vpop.permute.xlu0 %1126 }
 0x57c   :  { %2471 = vmatmul.mubr.msk.f32.vlgmr.msra.gmra.mxu0 %vm224_vm3, %v1127_v22 }
 0x57d   :  { %2480 = vmatprep.mubr.msk.f32.mxu0 %vm2660_vm2, %v2659_v13  ;;  %v2584_v23 = vpop.eup %2583 }
 0x581   :  { %v2586_v27 = vpop.eup %2585 }
 0x5a5   :  { %v803_v24 = vpop.f32.mrf.mxu1 }
 0x5a6   :  { %v883_v25 = vmul.f32 %v2584_v23, %v803_v24 }
 0x5a7   :  { %v2447_v26 = vpop.f32.mrf.mxu1 }
 0x5a8   :  { %2455 = vmatprep.mubr.msk.f32.mxu1 %vm224_vm3, %v883_v25 }
 0x5a9   :  { %v879_v28 = vpop.f32.mrf.mxu0 }
 0x5aa   :  { %v884_v29 = vmul.f32 %v2586_v27, %v879_v28 }
 0x5ab   :  { %v2452_v30 = vpop.f32.mrf.mxu0 }
 0x5ac   :  { %2456 = vmatmul.mubr.msk.f32.vlgmr.msra.gmra.mxu1 %vm224_vm3, %v884_v29 }
 0x5ad   :  { %2464 = vmatpush3.xpose.msk.msra.mxu1 %vm224_vm3, %v1051_v21  ;;  %2465 = vmatprep.mubr.msk.f32.mxu1 %vm2660_vm2, %v2659_v13 }
 0x5ae   :  { %2473 = vmatprep.subr.mxu1 %v2659_v13 }
 0x5b0   :  { %2466 = vmatmul.mubr.msk.f32.vlgmr.msra.gmra.mxu1 %vm224_vm3, %v1049_v31 }
 0x5b1   :  { %2475 = vmatprep.mubr.msk.f32.mxu1 %vm2660_vm2, %v2659_v13 }
 0x5dd   :  { %v2787_v32 = vpop.f32.mrf.mxu0 }
 0x5df   :  { %v1039_v33 = vpop.f32.mrf.mxu0 }
 0x63c   :  { %v1200_v34 = vpop.f32.mrf.mxu0 }
 0x63d   :  { %v1205_v35 = vmul.f32 0.35355338, %v1200_v34 }
 0x63e   :  { %v2472_v36 = vpop.f32.mrf.mxu0 }
 0x63f   :  { %v1209_v37 = vsel %vm224_vm3, %v1205_v35, -inf  ;;  %v1796_v36 = vld [vmem:[#allocation4 + $0x48] sm:$0xff] }
 0x640   :  { %1210 = vmax.xlane.f32.xlu0 %v1209_v37 }
 0x656   :  { %1226 = vrot.lane.b32.xlu0 %v2707_v17, %s2668_s26 }
 0x66c   :  { %v2791_v38 = vpop.f32.mrf.mxu1 }
 0x66d   :  { %v1045_v15 = vadd.f32 %v2787_v32, %v2791_v38 }
 0x66e   :  { %v958_v39 = vpop.f32.mrf.mxu1 }
 0x66f   :  { %v2793_v40 = vadd.f32 %v1039_v33, %v958_v39 }
 0x670   :  { %v1122_v41 = vpop.f32.mrf.mxu1 }
 0x671   :  { %v1204_v42 = vmul.f32 0.35355338, %v1122_v41 }
 0x672   :  { %v2467_v43 = vpop.f32.mrf.mxu1 }
 0x673   :  { %v1206_v44 = vsel %vm224_vm3, %v1204_v42, -inf }
 0x674   :  { %1207 = vmax.xlane.f32.xlu1 %v1206_v44 }
 0x685   :  { %1302 = vrot.lane.b32.xlu1 %v2710_v18, %s2668_s26 }
 0x689   :  { %1544 = vrot.lane.b32.xlu1 %v2710_v18, %s2669_s27 }
 0x6c9   :  { %v1211_v45 = vpop.xlane.xlu0 %1210 }
 0x6ca   :  { %v1213_v46 = vsub.f32 %v1205_v35, %v1211_v45 }
 0x6cc   :  { %v1216_v47 = vmul.f32 1.442695, %v1213_v46 }
 0x6cd   :  { %v1227_v48 = vpop.permute.xlu0 %1226 }
 0x6ce   :  { %2587 = vpow2.f32 %v1216_v47  ;;  %2474 = vmatpush3.msra.mxu1 %v1227_v48  ;;  %v2307_v48 = vld [vmem:[#allocation4 + $0xd2] ss:$0 sm:$0xff] }
 0x6cf   :  { %2483 = vmatprep.subr.mxu1 %v1380_v57 }
 0x6db   :  { %v2588_v49 = vpop.eup %2587 }
 0x6dc   :  { %v1221_v50 = vsel %vm224_vm3, %v2588_v49, 0.0 }
 0x6dd   :  { %1222 = vadd.xlane.f32.xlu0 %v1221_v50 }
 0x6f3   :  { %1466 = vrot.lane.b32.xlu0 %v2707_v17, %s2669_s27 }
 0x6f7   :  { %1542 = vrot.lane.b32.xlu0 %v2710_v18, %s2670_s28 }
 0x6fd   :  { %v1208_v51 = vpop.xlane.xlu1 %1207 }
 0x6fe   :  { %v1212_v52 = vsub.f32 %v1204_v42, %v1208_v51 }
 0x700   :  { %v1214_v53 = vmul.f32 1.442695, %v1212_v52 }
 0x701   :  { %v1303_v54 = vpop.permute.xlu1 %1302 }
 0x702   :  { %2589 = vpow2.f32 %v1214_v53  ;;  %2479 = vmatpush3.msra.mxu0 %v1303_v54 }
 0x703   :  { %2481 = vmatmul.mubr.msk.f32.vlgmr.msra.gmra.mxu0 %vm224_vm3, %v2588_v49  ;;  %2488 = vmatprep.subr.mxu0 %v2659_v13 }
 0x704   :  { %2490 = vmatprep.mubr.msk.f32.mxu0 %vm2660_vm2, %v2659_v13 }
 0x705   :  { %v1545_v60 = vpop.permute.xlu1 %1544 }
 0x70f   :  { %v2590_v55 = vpop.eup %2589 }
 0x710   :  { %2476 = vmatmul.mubr.msk.f32.vlgmr.msra.gmra.mxu1 %vm224_vm3, %v2590_v55  ;;  %v1218_v56 = vsel %vm224_vm3, %v2590_v55, 0.0 }
 0x711   :  { %1219 = vadd.xlane.f32.xlu1 %v1218_v56  ;;  %2484 = vmatpush3.msra.mxu1 %v1380_v57 }
 0x712   :  { %2493 = vmatprep.subr.mxu1 %v2659_v13 }
 0x722   :  { %1464 = vrot.lane.b32.xlu1 %v2707_v17, %s2670_s28 }
 0x766   :  { %v1223_v58 = vpop.xlane.xlu0 %1222 }
 0x76a   :  { %v1467_v59 = vpop.permute.xlu0 %1466 }
 0x76b   :  { %2489 = vmatpush3.xpose.msk.msra.mxu0 %vm224_vm3, %v1467_v59 }
 0x76c   :  { %2498 = vmatprep.subr.mxu0 %v2659_v13 }
 0x76e   :  { %v1543_v7 = vpop.permute.xlu0 %1542 }
 0x79a   :  { %v1220_v61 = vpop.xlane.xlu1 %1219 }
 0x79b   :  { %2591 = vrcp.f32 %v1220_v61 }
 0x79c   :  { %2593 = vrcp.f32 %v1223_v58 }
 0x79e   :  { %v1465_v62 = vpop.permute.xlu1 %1464 }
 0x79f   :  { %2491 = vmatmul.mubr.msk.f32.vlgmr.msra.gmra.mxu0 %vm224_vm3, %v1465_v62 }
 0x7a0   :  { %2500 = vmatprep.mubr.msk.f32.mxu0 %vm2660_vm2, %v2659_v13 }
 0x7a8   :  { %v2592_v1 = vpop.eup %2591 }
 0x7a9   :  { %v2594_v3 = vpop.eup %2593 }
 0x7c3   :  { %v1374_v63 = vpop.f32.mrf.mxu0 }
 0x7c4   :  { %v1379_v5 = vmul.f32 %v2594_v3, %v1374_v63  ;;  %v1933_v3 = vld [vmem:[#allocation4 + $0x68] sm:$0xff] }
 0x7c5   :  { %v2482_v0 = vpop.f32.mrf.mxu0 }
 0x7d0   :  { %v1298_v2 = vpop.f32.mrf.mxu1 }
 0x7d1   :  { %v1378_v4 = vmul.f32 %v2592_v1, %v1298_v2 }
 0x7d2   :  { %v2477_v6 = vpop.f32.mrf.mxu1 }
 0x7d3   :  { %2485 = vmatprep.mubr.msk.f32.mxu1 %vm224_vm3, %v1378_v4  ;;  %v1931_v4 = vld [vmem:[#allocation4 + $0x58] sm:$0xff]  ;;  %v2029_v6 = vld [vmem:[#allocation4 + $0xa8] sm:$0xff] }
 0x7d4   :  { %2486 = vmatmul.mubr.msk.f32.vlgmr.msra.gmra.mxu1 %vm224_vm3, %v1379_v5  ;;  %v1930_v5 = vld [vmem:[#allocation4 + $0x50] sm:$0xff] }
 0x7d5   :  { %2494 = vmatpush3.xpose.msk.msra.mxu1 %vm224_vm3, %v1545_v60  ;;  %2495 = vmatprep.mubr.msk.f32.mxu1 %vm2660_vm2, %v2659_v13 }
 0x7d6   :  { %2503 = vmatprep.subr.mxu1 %v2659_v13 }
 0x7d8   :  { %2496 = vmatmul.mubr.msk.f32.vlgmr.msra.gmra.mxu1 %vm224_vm3, %v1543_v7  ;;  %v2028_v7 = vld [vmem:[#allocation4 + $0xa0] sm:$0xff] }
 0x7d9   :  { %2505 = vmatprep.mubr.msk.f32.mxu1 %vm2660_vm2, %v2659_v13 }
 0x85f   :  { %v1538_v8 = vpop.f32.mrf.mxu0 }
 0x860   :  { %v1620_v9 = vmul.f32 0.35355338, %v1538_v8  ;;  %v2027_v8 = vld [vmem:[#allocation4 + $0x98] sm:$0xff] }
 0x861   :  { %v2492_v10 = vpop.f32.mrf.mxu0 }
 0x862   :  { %v1622_v14 = vsel %vm224_vm3, %v1620_v9, -inf }
 0x863   :  { %1623 = vmax.xlane.f32.xlu1 %v1622_v14 }
 0x874   :  { %1718 = vrot.lane.b32.xlu1 %v2710_v18, %s2671_s29 }
 0x894   :  { %v2487_v16 = vpop.f32.mrf.mxu1 }
 0x895   :  { %v1463_v19 = vadd.f32 %v2487_v16, %v1045_v15 }
 0x896   :  { %v1453_v20 = vpop.f32.mrf.mxu1 }
 0x897   :  { %v1462_v21 = vadd.f32 %v1453_v20, %v2793_v40 }
 0x898   :  { %v1616_v22 = vpop.f32.mrf.mxu1 }
 0x899   :  { %v1621_v23 = vmul.f32 0.35355338, %v1616_v22  ;;  %v2308_v22 = vld [vmem:[#allocation4 + $0xd3] ss:$0 sm:$0xff] }
 0x89a   :  { %v2497_v24 = vpop.f32.mrf.mxu1 }
 0x89b   :  { %v1625_v25 = vsel %vm224_vm3, %v1621_v23, -inf }
 0x89c   :  { %1626 = vmax.xlane.f32.xlu0 %v1625_v25 }
 0x8b2   :  { %1642 = vrot.lane.b32.xlu0 %v2707_v17, %s2671_s29 }
 0x8ec   :  { %v1624_v26 = vpop.xlane.xlu1 %1623 }
 0x8ed   :  { %v1628_v27 = vsub.f32 %v1620_v9, %v1624_v26  ;;  %v2026_v9 = vld [vmem:[#allocation4 + $0x90] sm:$0xff] }
 0x8ef   :  { %v1630_v28 = vmul.f32 1.442695, %v1628_v27  ;;  %v2309_v27 = vld [vmem:[#allocation4 + $0xd4] ss:$0 sm:$0xff] }
 0x8f0   :  { %v1719_v18 = vpop.permute.xlu1 %1718 }
 0x8f1   :  { %2595 = vpow2.f32 %v1630_v28  ;;  %2504 = vmatpush3.msra.mxu1 %v1719_v18 }
 0x8f2   :  { %2513 = vmatprep.subr.mxu1 %v1933_v3 }
 0x8fe   :  { %v2596_v29 = vpop.eup %2595 }
 0x8ff   :  { %v1634_v30 = vsel %vm224_vm3, %v2596_v29, 0.0 }
 0x900   :  { %1635 = vadd.xlane.f32.xlu1 %v1634_v30  ;;  %v2025_v30 = vld [vmem:[#allocation4 + $0x88] sm:$0xff] }
 0x925   :  { %v1627_v31 = vpop.xlane.xlu0 %1626 }
 0x926   :  { %v1629_v32 = vsub.f32 %v1621_v23, %v1627_v31  ;;  %v2024_v31 = vld [vmem:[#allocation4 + $0x80] sm:$0xff] }
 0x928   :  { %v1632_v33 = vmul.f32 1.442695, %v1629_v32  ;;  %v2023_v32 = vld [vmem:[#allocation4 + $0x78] sm:$0xff] }
 0x929   :  { %v1643_v34 = vpop.permute.xlu0 %1642 }
 0x92a   :  { %2597 = vpow2.f32 %v1632_v33  ;;  %2499 = vmatpush3.msra.mxu0 %v1643_v34  ;;  %v2022_v33 = vld [vmem:[#allocation4 + $0x70] sm:$0xff] }
 0x92b   :  { %2501 = vmatmul.mubr.msk.f32.vlgmr.msra.gmra.mxu0 %vm224_vm3, %v2596_v29  ;;  %2508 = vmatprep.subr.mxu0 %v1796_v36  ;;  %v2310_v34 = vld [vmem:[#allocation4 + $0xd5] ss:$0 sm:$0xff] }
 0x92c   :  { %2509 = vmatpush3.msra.mxu0 %v1796_v36 }
 0x92d   :  { %2524 = vmatprep.subr.mxu0 %v2029_v6 }
 0x937   :  { %v2598_v35 = vpop.eup %2597 }
 0x938   :  { %2506 = vmatmul.mubr.msk.f32.vlgmr.msra.gmra.mxu1 %vm224_vm3, %v2598_v35  ;;  %v1637_v17 = vsel %vm224_vm3, %v2598_v35, 0.0 }
 0x939   :  { %1638 = vadd.xlane.f32.xlu0 %v1637_v17  ;;  %2514 = vmatpush3.msra.mxu1 %v1933_v3 }
 0x989   :  { %v1636_v37 = vpop.xlane.xlu1 %1635 }
 0x98a   :  { %2599 = vrcp.f32 %v1636_v37 }
 0x997   :  { %v2600_v39 = vpop.eup %2599 }
 0x9c2   :  { %v1639_v38 = vpop.xlane.xlu0 %1638 }
 0x9c3   :  { %2601 = vrcp.f32 %v1639_v38 }
 0x9d0   :  { %v2602_v43 = vpop.eup %2601 }
 0x9eb   :  { %v1714_v40 = vpop.f32.mrf.mxu0 }
 0x9ec   :  { %v1794_v41 = vmul.f32 %v2600_v39, %v1714_v40  ;;  %v2313_v40 = vld [vmem:[#allocation4 + $0xd6] ss:$0 sm:$0xff] }
 0x9ed   :  { %v2502_v42 = vpop.f32.mrf.mxu0 }
 0x9ee   :  { %2510 = vmatprep.mubr.msk.f32.mxu0 %vm224_vm3, %v1794_v41 }
 0x9f8   :  { %v1790_v44 = vpop.f32.mrf.mxu1 }
 0x9f9   :  { %v1795_v45 = vmul.f32 %v2602_v43, %v1790_v44 }
 0x9fa   :  { %v2507_v46 = vpop.f32.mrf.mxu1 }
 0x9fb   :  { %2511 = vmatmul.mubr.msk.f32.vlgmr.msra.gmra.mxu0 %vm224_vm3, %v1795_v45 }
 0x9fc   :  { %2525 = vmatpush3.msra.mxu0 %v2029_v6 }
 0x9fd   :  { %2526 = vmatprep.subr.mxu0 %v2028_v7 }
 0x9fe   :  { %2527 = vmatpush3.msra.mxu0 %v2028_v7  ;;  %v2317_v7 = vld [vmem:[#allocation4 + $0xd8] ss:$0 sm:$0xff] }
 0x9ff   :  { %2528 = vmatprep.subr.mxu0 %v2027_v8 }
 0xa00   :  { %2529 = vmatpush3.msra.mxu0 %v2027_v8 }
 0xa01   :  { %2530 = vmatprep.subr.mxu0 %v2026_v9 }
 0xa02   :  { %2531 = vmatpush3.msra.mxu0 %v2026_v9 }
 0xa03   :  { %2532 = vmatprep.subr.mxu0 %v2025_v30 }
 0xa04   :  { %2533 = vmatpush3.msra.mxu0 %v2025_v30 }
 0xa05   :  { %2534 = vmatprep.subr.mxu0 %v2024_v31 }
 0xa06   :  { %2535 = vmatpush3.msra.mxu0 %v2024_v31 }
 0xa07   :  { %2536 = vmatprep.subr.mxu0 %v2023_v32 }
 0xa08   :  { %2537 = vmatpush3.msra.mxu0 %v2023_v32 }
 0xa09   :  { %2538 = vmatprep.subr.mxu0 %v2022_v33 }
 0xa0a   :  { %2539 = vmatpush3.msra.mxu0 %v2022_v33  ;;  %v2318_v33 = vld [vmem:[#allocation4 + $0xd9] ss:$0 sm:$0xff] }
 0xabb   :  { %v2512_v47 = vpop.f32.mrf.mxu0 }
 0xabc   :  { %v1879_v49 = vadd.f32 %v2512_v47, %v1463_v19 }
 0xabd   :  { %v1869_v50 = vpop.f32.mrf.mxu0 }
 0xabe   :  { %v1886_v51 = vadd.f32 %v2307_v48, %v1879_v49  ;;  %v1878_v52 = vadd.f32 %v1869_v50, %v1462_v21 }
 0xac0   :  { %v1885_v53 = vadd.f32 %v2307_v48, %v1878_v52  ;;  %v1888_v54 = vadd.f32 %v1886_v51, %v2695_v12 }
 0xac2   :  { %v1894_v55 = vsel %vm139_vm1, %v1888_v54, 0.0  ;;  %v1887_v56 = vadd.f32 %v1885_v53, %v2693_v11  ;;  %v1932_v11 = vld [vmem:[#allocation4 + $0x60] sm:$0xff] }
 0xac3   :  { %1895 = vadd.xlane.f32.xlu1 %v1894_v55  ;;  %2515 = vmatprep.subr.mxu1 %v1932_v11 }
 0xac4   :  { %v1891_v57 = vsel %vm139_vm1, %v1887_v56, 0.0  ;;  %2516 = vmatpush3.msra.mxu1 %v1932_v11 }
 0xac5   :  { %1892 = vadd.xlane.f32.xlu0 %v1891_v57  ;;  %2517 = vmatprep.subr.mxu1 %v1931_v4 }
 0xac6   :  { %2518 = vmatpush3.msra.mxu1 %v1931_v4  ;;  %v2316_v4 = vld [vmem:[#allocation4 + $0xd7] ss:$0 sm:$0xff] }
 0xac7   :  { %2519 = vmatprep.subr.mxu1 %v1930_v5 }
 0xac8   :  { %2520 = vmatpush3.msra.mxu1 %v1930_v5 }
 0xac9   :  { %2543 = vmatprep.subr.mxu1 %v2659_v13 }
 0xb4c   :  { %v1896_v58 = vpop.xlane.xlu1 %1895 }
 0xb4d   :  { %v1899_v59 = vmul.f32 0.03125, %v1896_v58 }
 0xb4e   :  { %v1893_v60 = vpop.xlane.xlu0 %1892 }
 0xb4f   :  { %v1901_v61 = vsub.f32 %v1888_v54, %v1899_v59  ;;  %v1898_v62 = vmul.f32 0.03125, %v1893_v60  ;;  %v2179_v59 = vld [vmem:[#allocation4 + $0xc8] sm:$0xff]  ;;  %v2178_v60 = vld [vmem:[#allocation4 + $0xc0] sm:$0xff] }
 0xb51   :  { %v1900_v63 = vsub.f32 %v1887_v56, %v1898_v62  ;;  %v1903_v0 = vmul.f32 %v1901_v61, %v1901_v61  ;;  %v2176_v62 = vld [vmem:[#allocation4 + $0xb0] sm:$0xff] }
 0xb53   :  { %v1907_v1 = vsel %vm139_vm1, %v1903_v0, 0.0  ;;  %v1902_v2 = vmul.f32 %v1900_v63, %v1900_v63 }
 0xb54   :  { %1908 = vadd.xlane.f32.xlu1 %v1907_v1 }
 0xb55   :  { %v1904_v12 = vsel %vm139_vm1, %v1902_v2, 0.0 }
 0xb56   :  { %1905 = vadd.xlane.f32.xlu0 %v1904_v12 }
 0xbdd   :  { %v1909_v10 = vpop.xlane.xlu1 %1908 }
 0xbde   :  { %v1911_v14 = vmul.f32 0.03125, %v1909_v10 }
 0xbdf   :  { %v1906_v15 = vpop.xlane.xlu0 %1905 }
 0xbe0   :  { %v1913_v16 = vadd.f32 1e-05, %v1911_v14  ;;  %v1910_v19 = vmul.f32 0.03125, %v1906_v15 }
 0xbe2   :  { %2603 = vrsqrt.f32 %v1913_v16  ;;  %v1912_v20 = vadd.f32 1e-05, %v1910_v19 }
 0xbe4   :  { %2605 = vrsqrt.f32 %v1912_v20 }
 0xbef   :  { %v2604_v21 = vpop.eup %2603 }
 0xbf0   :  { %v1917_v23 = vmul.f32 %v2604_v21, %v1901_v61  ;;  %v2177_v61 = vld [vmem:[#allocation4 + $0xb8] sm:$0xff] }
 0xbf1   :  { %v2606_v24 = vpop.eup %2605 }
 0xbf2   :  { %v1916_v25 = vmul.f32 %v2606_v24, %v1900_v63  ;;  %v1923_v26 = vmul.f32 %v2308_v22, %v1917_v23 }
 0xbf4   :  { %v1922_v28 = vmul.f32 %v2308_v22, %v1916_v25  ;;  %v1929_v29 = vadd.f32 %v2309_v27, %v1923_v26 }
 0xbf6   :  { %v1928_v18 = vadd.f32 %v2309_v27, %v1922_v28 }
 0xbf8   :  { %2521 = vmatprep.mubr.msk.f32.mxu1 %vm139_vm1, %v1928_v18 }
 0xbf9   :  { %2522 = vmatmul.mubr.msk.f32.vlgmr.msra.gmra.mxu1 %vm139_vm1, %v1929_v29 }
 0xbfa   :  { %2551 = vmatprep.mubr.msk.f32.mxu1 %vm2660_vm2, %v2659_v13  ;;  %2544 = vmatpush3.msra.mxu1 %v2179_v59 }
 0xbfb   :  { %2545 = vmatprep.subr.mxu1 %v2659_v13 }
 0xbfc   :  { %2546 = vmatpush3.msra.mxu1 %v2178_v60 }
 0xbfd   :  { %2547 = vmatprep.subr.mxu1 %v2659_v13 }
 0xbfe   :  { %2548 = vmatpush3.msra.mxu1 %v2177_v61 }
 0xbff   :  { %2549 = vmatprep.subr.mxu1 %v2659_v13 }
 0xc00   :  { %2550 = vmatpush3.msra.mxu1 %v2176_v62 }
 0xcb9   :  { %v2523_v35 = vpop.f32.mrf.mxu1 }
 0xcba   :  { %v2017_v17 = vadd.f32 %v2523_v35, %v2310_v34 }
 0xcbb   :  { %v2011_v36 = vpop.f32.mrf.mxu1 }
 0xcbc   :  { %v2012_v37 = vadd.f32 %v2310_v34, %v2011_v36  ;;  %v2021_v39 = vmax.f32 %v2017_v17, 0.0 }
 0xcbe   :  { %v2020_v38 = vmax.f32 %v2012_v37, 0.0 }
 0xcc0   :  { %2540 = vmatprep.mubr.msk.f32.mxu0 %vm2035_vm4, %v2020_v38 }
 0xcc1   :  { %2541 = vmatmul.mubr.msk.f32.vlgmr.msra.gmra.mxu0 %vm2035_vm4, %v2021_v39 }
 0xd81   :  { %v2542_v41 = vpop.f32.mrf.mxu0 }
 0xd82   :  { %v2114_v42 = vadd.f32 %v2542_v41, %v2313_v40 }
 0xd83   :  { %v2108_v43 = vpop.f32.mrf.mxu0 }
 0xd84   :  { %v2109_v44 = vadd.f32 %v2313_v40, %v2108_v43  ;;  %v2118_v45 = vadd.f32 %v2114_v42, %v1929_v29 }
 0xd86   :  { %v2124_v46 = vsel %vm139_vm1, %v2118_v45, 0.0  ;;  %v2117_v47 = vadd.f32 %v2109_v44, %v1928_v18 }
 0xd87   :  { %2125 = vadd.xlane.f32.xlu1 %v2124_v46 }
 0xd88   :  { %v2121_v48 = vsel %vm139_vm1, %v2117_v47, 0.0 }
 0xd89   :  { %2122 = vadd.xlane.f32.xlu0 %v2121_v48 }
 0xe10   :  { %v2126_v49 = vpop.xlane.xlu1 %2125 }
 0xe11   :  { %v2128_v50 = vmul.f32 0.03125, %v2126_v49 }
 0xe12   :  { %v2123_v51 = vpop.xlane.xlu0 %2122 }
 0xe13   :  { %v2130_v52 = vsub.f32 %v2118_v45, %v2128_v50  ;;  %v2127_v53 = vmul.f32 0.03125, %v2123_v51 }
 0xe15   :  { %v2129_v54 = vsub.f32 %v2117_v47, %v2127_v53  ;;  %v2132_v55 = vmul.f32 %v2130_v52, %v2130_v52 }
 0xe17   :  { %v2136_v56 = vsel %vm139_vm1, %v2132_v55, 0.0  ;;  %v2131_v57 = vmul.f32 %v2129_v54, %v2129_v54 }
 0xe18   :  { %2137 = vadd.xlane.f32.xlu1 %v2136_v56 }
 0xe19   :  { %v2133_v58 = vsel %vm139_vm1, %v2131_v57, 0.0 }
 0xe1a   :  { %2134 = vadd.xlane.f32.xlu0 %v2133_v58 }
 0xea1   :  { %v2138_v63 = vpop.xlane.xlu1 %2137 }
 0xea2   :  { %v2140_v0 = vmul.f32 0.03125, %v2138_v63 }
 0xea3   :  { %v2135_v1 = vpop.xlane.xlu0 %2134 }
 0xea4   :  { %v2142_v2 = vadd.f32 1e-05, %v2140_v0  ;;  %v2139_v12 = vmul.f32 0.03125, %v2135_v1 }
 0xea6   :  { %2607 = vrsqrt.f32 %v2142_v2  ;;  %v2141_v3 = vadd.f32 1e-05, %v2139_v12 }
 0xea8   :  { %2609 = vrsqrt.f32 %v2141_v3 }
 0xeb3   :  { %v2608_v11 = vpop.eup %2607 }
 0xeb4   :  { %v2146_v5 = vmul.f32 %v2608_v11, %v2130_v52 }
 0xeb5   :  { %v2610_v6 = vpop.eup %2609 }
 0xeb6   :  { %v2152_v8 = vmul.f32 %v2316_v4, %v2146_v5  ;;  %v2145_v9 = vmul.f32 %v2610_v6, %v2129_v54 }
 0xeb8   :  { %v2151_v10 = vmul.f32 %v2316_v4, %v2145_v9  ;;  %v2158_v14 = vadd.f32 %v2317_v7, %v2152_v8 }
 0xeba   :  { %v2157_v15 = vadd.f32 %v2317_v7, %v2151_v10  ;;  %v2166_v13 = vsel %vm139_vm1, %v2158_v14, 0.0 }
 0xebb   :  { %v2167_v16 = vrot.slane %v2166_v13, 4 }
 0xebc   :  { %v2159_v19 = vsel %vm139_vm1, %v2157_v15, 0.0 }
 0xebd   :  { %v2160_v20 = vrot.slane %v2159_v19, 4  ;;  %v2168_v21 = vadd.f32 %v2167_v16, %v2166_v13 }
 0xebf   :  { %v2161_v22 = vadd.f32 %v2160_v20, %v2159_v19  ;;  %v2169_v23 = vrot.slane %v2168_v21, 2 }
 0xec1   :  { %v2162_v24 = vrot.slane %v2161_v22, 2  ;;  %v2170_v25 = vadd.f32 %v2169_v23, %v2168_v21 }
 0xec3   :  { %v2163_v26 = vadd.f32 %v2162_v24, %v2161_v22  ;;  %v2171_v27 = vrot.slane %v2170_v25, 1 }
 0xec5   :  { %v2164_v28 = vrot.slane %v2163_v26, 1  ;;  %v2172_v18 = vadd.f32 %v2171_v27, %v2170_v25 }
 0xec7   :  { %v2165_v29 = vadd.f32 %v2164_v28, %v2163_v26  ;;  %v2175_v31 = vmul.f32 0.125, %v2172_v18 }
 0xec9   :  { %v2174_v30 = vmul.f32 0.125, %v2165_v29 }
 0xecb   :  { %v2188_v32 = vsel %vm2187_vm5, %v2175_v31, %v2174_v30 }
 0xecc   :  { %2552 = vmatmul.mubr.msk.f32.vlgmr.msra.gmra.mxu1 %vm139_vm1, %v2188_v32 }
 0xf8c   :  { %v2257_v34 = vpop.f32.mrf.mxu1 }
 0xf8d   :  { %v2258_v35 = vadd.f32 %v2318_v33, %v2257_v34 }
 0xf8e   :  { %v2553_v17 = vpop.f32.mrf.mxu1 }
 0xf8f   :  { %2262 = vst.msk [vmem:[%s2862_s2] sm:$0x3] %vm2261_vm6, %v2258_v35 }
 0xf90   :  { %2267 = vsyncpa [#allocation3], 1 }
 0xf91   :  { %2268 = vsyncpa [#allocation5], 1 }

</bundles_post_ra>
